<compile_context>
chip_gen: v7x
topology: tpu7x:2x2x1
jax: 0.10.0
libtpu: 0.0.40
codegen_flags: <defaults>
</compile_context>

<pallas_src>
import jax
import jax.numpy as jnp
from jax.experimental import pallas as pl
from jax.experimental.pallas import tpu as pltpu

N_EMBD = 32          # n_embd (small, consistent with the module: C divisible by n_head, even)
N_HEAD = 4           # n_head
HEAD_SIZE = N_EMBD // N_HEAD
B = 2                # batch
T = 8                # sequence length (T <= block_size)


def attention_kernel(x_ref, wf_ref, wp_ref, bp_ref, cos_ref, sin_ref, mask_ref,
                     o_ref, attn_scratch):
    C = N_EMBD
    x = x_ref[...]                                   # (B*T, C) — whole batch in one step

    # --- single fused projection: [Wq*scale | Wk | Wv | (Wq*scale)@P | Wk@P] ---
    qkv = jnp.dot(x, wf_ref[...], preferred_element_type=jnp.float32)   # (B*T, 5C)
    q   = qkv[:, 0 * C:1 * C]          # already scaled by 1/sqrt(head_size)
    k   = qkv[:, 1 * C:2 * C]
    v   = qkv[:, 2 * C:3 * C]
    qsw = qkv[:, 3 * C:4 * C]          # pair-swapped (scaled) q, from fused Wq@P columns
    ksw = qkv[:, 4 * C:5 * C]          # pair-swapped k

    # --- RoPE over the full embedding dim (matches precompute_theta_pos_frequencies(n_embd, T)) ---
    cos = cos_ref[...]                 # (B*T, C)
    sin = sin_ref[...]                 # sign-folded sin: out = x*cos + swap(x)*sin_signed
    q = q * cos + qsw * sin
    k = k * cos + ksw * sin

    kT = k.T                            # single transpose (C, B*T); heads/batches slice it
    mask_bias = mask_ref[...]           # (T, T) additive causal bias: 0 / -1e30

    # --- per-(batch, head) causal attention; static unrolled loops (B, N_HEAD tiny) ---
    for b in range(B):
        r0 = b * T
        for h in range(N_HEAD):
            s = h * HEAD_SIZE
            qh  = q[r0:r0 + T, s:s + HEAD_SIZE]       # (T, D)
            khT = kT[s:s + HEAD_SIZE, r0:r0 + T]      # (D, T) sublane/lane slice, no transpose
            vh  = v[r0:r0 + T, s:s + HEAD_SIZE]       # (T, D)

            att = jnp.dot(qh, khT, preferred_element_type=jnp.float32) + mask_bias
            att = att - jnp.max(att, axis=-1, keepdims=True)
            p = jnp.exp(att)
            denom = jnp.sum(p, axis=-1, keepdims=True)            # (T, 1)
            oh = jnp.dot(p, vh, preferred_element_type=jnp.float32)
            oh = oh * pl.reciprocal(denom, approx=True)           # normalize after P@V (EUP)

            # write head result straight into its lane slice (no concatenate)
            attn_scratch[r0:r0 + T, s:s + HEAD_SIZE] = oh

    # --- output projection (n_head > 1 so proj exists, with bias) ---
    out = jnp.dot(attn_scratch[...], wp_ref[...],
                  preferred_element_type=jnp.float32) + bp_ref[...]
    o_ref[...] = out.astype(o_ref.dtype)


def rope_tables(seq_len: int, dim: int):
    """cos / sign-folded-sin tables over the full embedding width, and pair-swap matrix."""
    j = jnp.arange(0, dim, 2, dtype=jnp.float32)
    theta = 1.0 / (10000.0 ** (j / dim))                    # (dim/2,)
    m = jnp.arange(seq_len, dtype=jnp.float32)
    freqs = jnp.outer(m, theta)                             # (T, dim/2)
    cos_full = jnp.repeat(jnp.cos(freqs), 2, axis=-1)       # (T, dim)
    sin_full = jnp.repeat(jnp.sin(freqs), 2, axis=-1)       # (T, dim)
    sign = jnp.tile(jnp.array([-1.0, 1.0], jnp.float32), dim // 2)
    sin_signed = sin_full * sign
    idx = jnp.arange(dim)
    perm = jnp.zeros((dim, dim), jnp.float32).at[idx ^ 1, idx].set(1.0)  # (x @ perm)[c] = x[c^1]
    return cos_full, sin_signed, perm


def attention_pallas(x, wq, wk, wv, wp, bp):
    Bz, Tz, Cz = x.shape
    cos_full, sin_signed, perm = rope_tables(Tz, Cz)

    # Fold the softmax scale into Wq, fuse QKV + RoPE pair-swap into one (C, 5C) weight.
    scale = HEAD_SIZE ** -0.5
    wq_s = wq * scale
    wf = jnp.concatenate([wq_s, wk, wv, wq_s @ perm, wk @ perm], axis=1)   # (C, 5C)

    x2 = x.reshape(Bz * Tz, Cz)                    # whole batch -> one grid step
    cos_t = jnp.tile(cos_full, (Bz, 1))            # (B*T, C)
    sin_t = jnp.tile(sin_signed, (Bz, 1))          # (B*T, C)
    bp2 = bp.reshape(1, Cz)

    row = jnp.arange(Tz)[:, None]
    col = jnp.arange(Tz)[None, :]
    mask_bias = jnp.where(row >= col, 0.0, -1e30).astype(jnp.float32)      # (T, T)

    full = lambda shape: pl.BlockSpec(shape, lambda i: (0,) * len(shape))
    out2 = pl.pallas_call(
        attention_kernel,
        out_shape=jax.ShapeDtypeStruct((Bz * Tz, Cz), jnp.float32),
        grid_spec=pltpu.PrefetchScalarGridSpec(
            num_scalar_prefetch=0,
            grid=(1,),                               # collapsed grid: one invocation
            in_specs=[
                full((Bz * Tz, Cz)),                 # x (flattened batch)
                full((Cz, 5 * Cz)),                  # fused [Wq*s|Wk|Wv|Wq*s@P|Wk@P]
                full((Cz, Cz)),                      # Wproj (pre-transposed)
                full((1, Cz)),                       # bproj
                full((Bz * Tz, Cz)),                 # cos table (tiled over batch)
                full((Bz * Tz, Cz)),                 # sign-folded sin table
                full((Tz, Tz)),                      # additive causal bias
            ],
            out_specs=full((Bz * Tz, Cz)),
            scratch_shapes=[pltpu.VMEM((Bz * Tz, Cz), jnp.float32)],
        ),
        compiler_params=pltpu.CompilerParams(dimension_semantics=("arbitrary",)),
    )(x2, wf, wp, bp2, cos_t, sin_t, mask_bias)
    return out2.reshape(Bz, Tz, Cz)


def attention_ref(x, wq, wk, wv, wp, bp):
    """Pure-JAX reference mirroring the PyTorch forward."""
    Bz, Tz, Cz = x.shape
    q = x @ wq
    k = x @ wk
    v = x @ wv
    j = jnp.arange(0, Cz, 2, dtype=jnp.float32)
    theta = 1.0 / (10000.0 ** (j / Cz))
    freqs = jnp.outer(jnp.arange(Tz, dtype=jnp.float32), theta)
    cos, sin = jnp.cos(freqs), jnp.sin(freqs)

    def rope(t):
        tr = t.reshape(Bz, Tz, Cz // 2, 2)
        re = tr[..., 0] * cos - tr[..., 1] * sin
        im = tr[..., 0] * sin + tr[..., 1] * cos
        return jnp.stack([re, im], axis=-1).reshape(Bz, Tz, Cz)

    q, k = rope(q), rope(k)
    q = q.reshape(Bz, Tz, N_HEAD, HEAD_SIZE).transpose(0, 2, 1, 3)
    k = k.reshape(Bz, Tz, N_HEAD, HEAD_SIZE).transpose(0, 2, 1, 3)
    v = v.reshape(Bz, Tz, N_HEAD, HEAD_SIZE).transpose(0, 2, 1, 3)
    att = jnp.einsum('bhqd,bhkd->bhqk', q, k) * (HEAD_SIZE ** -0.5)
    mask = jnp.tril(jnp.ones((Tz, Tz), bool))
    att = jnp.where(mask, att, -jnp.inf)
    att = jax.nn.softmax(att, axis=-1)
    out = jnp.einsum('bhqk,bhkd->bhqd', att, v)
    out = out.transpose(0, 2, 1, 3).reshape(Bz, Tz, Cz)
    return out @ wp + bp


if __name__ == "__main__":
    key = jax.random.PRNGKey(0)
    kx, kq, kk, kv, kp, kb = jax.random.split(key, 6)

    x = jax.random.normal(kx, (B, T, N_EMBD), jnp.float32)
    # Deterministic synthetic parameters (normal(0, 0.02), like the GPT init).
    # Weights are stored pre-transposed: y = x @ W.
    wq = 0.02 * jax.random.normal(kq, (N_EMBD, N_EMBD), jnp.float32)
    wk = 0.02 * jax.random.normal(kk, (N_EMBD, N_EMBD), jnp.float32)
    wv = 0.02 * jax.random.normal(kv, (N_EMBD, N_EMBD), jnp.float32)
    wp = 0.02 * jax.random.normal(kp, (N_EMBD, N_EMBD), jnp.float32)
    bp = 0.02 * jax.random.normal(kb, (N_EMBD,), jnp.float32)

    out = attention_pallas(x, wq, wk, wv, wp, bp)
    jax.block_until_ready(out)

    ref = attention_ref(x, wq, wk, wv, wp, bp)
    assert out.shape == (B, T, N_EMBD)
    # Tolerance slightly relaxed vs exact f32 because the softmax denominator uses
    # the EUP approximate reciprocal (pl.reciprocal(approx=True)).
    assert jnp.allclose(out, ref, rtol=2e-3, atol=2e-4), "mismatch vs reference"

    print("KERNEL_OK")
</pallas_src>

<mosaic_0001>
module attributes {stable_mosaic.version = 11 : i64} {
  func.func @attention_kernel(%arg0: i32, %arg1: memref<16x32xf32, #tpu.memory_space<vmem>>, %arg2: memref<32x160xf32, #tpu.memory_space<vmem>>, %arg3: memref<32x32xf32, #tpu.memory_space<vmem>>, %arg4: memref<1x32xf32, #tpu.memory_space<vmem>>, %arg5: memref<16x32xf32, #tpu.memory_space<vmem>>, %arg6: memref<16x32xf32, #tpu.memory_space<vmem>>, %arg7: memref<8x8xf32, #tpu.memory_space<vmem>>, %arg8: memref<16x32xf32, #tpu.memory_space<vmem>>, %arg9: memref<16x32xf32, #tpu.memory_space<vmem>>) attributes {dimension_semantics = [#tpu.dimension_semantics<arbitrary>], iteration_bounds = array<i64: 1>, scalar_prefetch = 0 : i64, scratch_operands = 1 : i64, tpu.core_type = #tpu.core_type<tc>, window_params = [{pipeline_mode = #tpu.pipeline_mode<synchronous>, transform_indices = @transform_0, window_bounds = array<i64: 16, 32>}, {pipeline_mode = #tpu.pipeline_mode<synchronous>, transform_indices = @transform_1, window_bounds = array<i64: 32, 160>}, {pipeline_mode = #tpu.pipeline_mode<synchronous>, transform_indices = @transform_2, window_bounds = array<i64: 32, 32>}, {pipeline_mode = #tpu.pipeline_mode<synchronous>, transform_indices = @transform_3, window_bounds = array<i64: 1, 32>}, {pipeline_mode = #tpu.pipeline_mode<synchronous>, transform_indices = @transform_4, window_bounds = array<i64: 16, 32>}, {pipeline_mode = #tpu.pipeline_mode<synchronous>, transform_indices = @transform_5, window_bounds = array<i64: 16, 32>}, {pipeline_mode = #tpu.pipeline_mode<synchronous>, transform_indices = @transform_6, window_bounds = array<i64: 8, 8>}, {pipeline_mode = #tpu.pipeline_mode<synchronous>, transform_indices = @transform_7, window_bounds = array<i64: 16, 32>}]} {
    %c0 = arith.constant 0 : index
    %c0_0 = arith.constant 0 : index
    %0 = vector.load %arg1[%c0, %c0_0] : memref<16x32xf32, #tpu.memory_space<vmem>>, vector<16x32xf32>
    %c0_1 = arith.constant 0 : index
    %c0_2 = arith.constant 0 : index
    %1 = vector.load %arg2[%c0_1, %c0_2] : memref<32x160xf32, #tpu.memory_space<vmem>>, vector<32x160xf32>
    %cst = arith.constant dense<0.000000e+00> : vector<16x160xf32>
    %2 = tpu.matmul %0, %1, %cst {dimension_numbers = #tpu.dot_dimension_numbers<[1], [0], [0], [1], [0, 0, 1, 1], [], []>} : vector<16x32xf32>, vector<32x160xf32>, vector<16x160xf32> -> vector<16x160xf32>
    %3 = vector.extract_strided_slice %2 {offsets = [0, 0], sizes = [16, 32], strides = [1, 1]} : vector<16x160xf32> to vector<16x32xf32>
    %4 = vector.extract_strided_slice %2 {offsets = [0, 32], sizes = [16, 32], strides = [1, 1]} : vector<16x160xf32> to vector<16x32xf32>
    %5 = vector.extract_strided_slice %2 {offsets = [0, 64], sizes = [16, 32], strides = [1, 1]} : vector<16x160xf32> to vector<16x32xf32>
    %6 = vector.extract_strided_slice %2 {offsets = [0, 96], sizes = [16, 32], strides = [1, 1]} : vector<16x160xf32> to vector<16x32xf32>
    %7 = vector.extract_strided_slice %2 {offsets = [0, 128], sizes = [16, 32], strides = [1, 1]} : vector<16x160xf32> to vector<16x32xf32>
    %c0_3 = arith.constant 0 : index
    %c0_4 = arith.constant 0 : index
    %8 = vector.load %arg5[%c0_3, %c0_4] : memref<16x32xf32, #tpu.memory_space<vmem>>, vector<16x32xf32>
    %c0_5 = arith.constant 0 : index
    %c0_6 = arith.constant 0 : index
    %9 = vector.load %arg6[%c0_5, %c0_6] : memref<16x32xf32, #tpu.memory_space<vmem>>, vector<16x32xf32>
    %10 = arith.mulf %3, %8 : vector<16x32xf32>
    %11 = arith.mulf %6, %9 : vector<16x32xf32>
    %12 = arith.addf %10, %11 : vector<16x32xf32>
    %13 = arith.mulf %4, %8 : vector<16x32xf32>
    %14 = arith.mulf %7, %9 : vector<16x32xf32>
    %15 = arith.addf %13, %14 : vector<16x32xf32>
    %16 = tpu.transpose %15, [1, 0] : vector<16x32xf32> -> vector<32x16xf32>
    %c0_7 = arith.constant 0 : index
    %c0_8 = arith.constant 0 : index
    %17 = vector.load %arg7[%c0_7, %c0_8] : memref<8x8xf32, #tpu.memory_space<vmem>>, vector<8x8xf32>
    %18 = vector.extract_strided_slice %12 {offsets = [0, 0], sizes = [8, 8], strides = [1, 1]} : vector<16x32xf32> to vector<8x8xf32>
    %19 = vector.extract_strided_slice %16 {offsets = [0, 0], sizes = [8, 8], strides = [1, 1]} : vector<32x16xf32> to vector<8x8xf32>
    %20 = vector.extract_strided_slice %5 {offsets = [0, 0], sizes = [8, 8], strides = [1, 1]} : vector<16x32xf32> to vector<8x8xf32>
    %cst_9 = arith.constant dense<0.000000e+00> : vector<8x8xf32>
    %21 = tpu.matmul %18, %19, %cst_9 {dimension_numbers = #tpu.dot_dimension_numbers<[1], [0], [0], [1], [0, 0, 1, 1], [], []>} : vector<8x8xf32>, vector<8x8xf32>, vector<8x8xf32> -> vector<8x8xf32>
    %22 = arith.addf %21, %17 : vector<8x8xf32>
    %cst_10 = arith.constant dense<0xFF800000> : vector<8xf32>
    %23 = vector.multi_reduction <maximumf>, %22, %cst_10 [1] : vector<8x8xf32> to vector<8xf32>
    %24 = vector.shape_cast %23 : vector<8xf32> to vector<8x1xf32>
    %25 = vector.broadcast %24 : vector<8x1xf32> to vector<8x8xf32>
    %26 = arith.subf %22, %25 : vector<8x8xf32>
    %27 = math.exp %26 : vector<8x8xf32>
    %cst_11 = arith.constant dense<0.000000e+00> : vector<8xf32>
    %28 = vector.multi_reduction <add>, %27, %cst_11 [1] : vector<8x8xf32> to vector<8xf32>
    %29 = vector.shape_cast %28 : vector<8xf32> to vector<8x1xf32>
    %cst_12 = arith.constant dense<0.000000e+00> : vector<8x8xf32>
    %30 = tpu.matmul %27, %20, %cst_12 {dimension_numbers = #tpu.dot_dimension_numbers<[1], [0], [0], [1], [0, 0, 1, 1], [], []>} : vector<8x8xf32>, vector<8x8xf32>, vector<8x8xf32> -> vector<8x8xf32>
    %31 = tpu.reciprocal %29 {approx = true} : vector<8x1xf32> -> vector<8x1xf32>
    %32 = vector.broadcast %31 : vector<8x1xf32> to vector<8x8xf32>
    %33 = arith.mulf %30, %32 : vector<8x8xf32>
    %c0_13 = arith.constant 0 : index
    %c0_14 = arith.constant 0 : index
    %34 = vector.load %arg9[%c0_13, %c0_14] : memref<16x32xf32, #tpu.memory_space<vmem>>, vector<8x8xf32>
    tpu.vector_store %arg9[%c0_13, %c0_14], %33 {strides = array<i32>} : memref<16x32xf32, #tpu.memory_space<vmem>>, vector<8x8xf32>,
    %35 = vector.extract_strided_slice %12 {offsets = [0, 8], sizes = [8, 8], strides = [1, 1]} : vector<16x32xf32> to vector<8x8xf32>
    %36 = vector.extract_strided_slice %16 {offsets = [8, 0], sizes = [8, 8], strides = [1, 1]} : vector<32x16xf32> to vector<8x8xf32>
    %37 = vector.extract_strided_slice %5 {offsets = [0, 8], sizes = [8, 8], strides = [1, 1]} : vector<16x32xf32> to vector<8x8xf32>
    %cst_15 = arith.constant dense<0.000000e+00> : vector<8x8xf32>
    %38 = tpu.matmul %35, %36, %cst_15 {dimension_numbers = #tpu.dot_dimension_numbers<[1], [0], [0], [1], [0, 0, 1, 1], [], []>} : vector<8x8xf32>, vector<8x8xf32>, vector<8x8xf32> -> vector<8x8xf32>
    %39 = arith.addf %38, %17 : vector<8x8xf32>
    %cst_16 = arith.constant dense<0xFF800000> : vector<8xf32>
    %40 = vector.multi_reduction <maximumf>, %39, %cst_16 [1] : vector<8x8xf32> to vector<8xf32>
    %41 = vector.shape_cast %40 : vector<8xf32> to vector<8x1xf32>
    %42 = vector.broadcast %41 : vector<8x1xf32> to vector<8x8xf32>
    %43 = arith.subf %39, %42 : vector<8x8xf32>
    %44 = math.exp %43 : vector<8x8xf32>
    %cst_17 = arith.constant dense<0.000000e+00> : vector<8xf32>
    %45 = vector.multi_reduction <add>, %44, %cst_17 [1] : vector<8x8xf32> to vector<8xf32>
    %46 = vector.shape_cast %45 : vector<8xf32> to vector<8x1xf32>
    %cst_18 = arith.constant dense<0.000000e+00> : vector<8x8xf32>
    %47 = tpu.matmul %44, %37, %cst_18 {dimension_numbers = #tpu.dot_dimension_numbers<[1], [0], [0], [1], [0, 0, 1, 1], [], []>} : vector<8x8xf32>, vector<8x8xf32>, vector<8x8xf32> -> vector<8x8xf32>
    %48 = tpu.reciprocal %46 {approx = true} : vector<8x1xf32> -> vector<8x1xf32>
    %49 = vector.broadcast %48 : vector<8x1xf32> to vector<8x8xf32>
    %50 = arith.mulf %47, %49 : vector<8x8xf32>
    %c0_19 = arith.constant 0 : index
    %c8 = arith.constant 8 : index
    %51 = vector.load %arg9[%c0_19, %c8] : memref<16x32xf32, #tpu.memory_space<vmem>>, vector<8x8xf32>
    tpu.vector_store %arg9[%c0_19, %c8], %50 {strides = array<i32>} : memref<16x32xf32, #tpu.memory_space<vmem>>, vector<8x8xf32>,
    %52 = vector.extract_strided_slice %12 {offsets = [0, 16], sizes = [8, 8], strides = [1, 1]} : vector<16x32xf32> to vector<8x8xf32>
    %53 = vector.extract_strided_slice %16 {offsets = [16, 0], sizes = [8, 8], strides = [1, 1]} : vector<32x16xf32> to vector<8x8xf32>
    %54 = vector.extract_strided_slice %5 {offsets = [0, 16], sizes = [8, 8], strides = [1, 1]} : vector<16x32xf32> to vector<8x8xf32>
    %cst_20 = arith.constant dense<0.000000e+00> : vector<8x8xf32>
    %55 = tpu.matmul %52, %53, %cst_20 {dimension_numbers = #tpu.dot_dimension_numbers<[1], [0], [0], [1], [0, 0, 1, 1], [], []>} : vector<8x8xf32>, vector<8x8xf32>, vector<8x8xf32> -> vector<8x8xf32>
    %56 = arith.addf %55, %17 : vector<8x8xf32>
    %cst_21 = arith.constant dense<0xFF800000> : vector<8xf32>
    %57 = vector.multi_reduction <maximumf>, %56, %cst_21 [1] : vector<8x8xf32> to vector<8xf32>
    %58 = vector.shape_cast %57 : vector<8xf32> to vector<8x1xf32>
    %59 = vector.broadcast %58 : vector<8x1xf32> to vector<8x8xf32>
    %60 = arith.subf %56, %59 : vector<8x8xf32>
    %61 = math.exp %60 : vector<8x8xf32>
    %cst_22 = arith.constant dense<0.000000e+00> : vector<8xf32>
    %62 = vector.multi_reduction <add>, %61, %cst_22 [1] : vector<8x8xf32> to vector<8xf32>
    %63 = vector.shape_cast %62 : vector<8xf32> to vector<8x1xf32>
    %cst_23 = arith.constant dense<0.000000e+00> : vector<8x8xf32>
    %64 = tpu.matmul %61, %54, %cst_23 {dimension_numbers = #tpu.dot_dimension_numbers<[1], [0], [0], [1], [0, 0, 1, 1], [], []>} : vector<8x8xf32>, vector<8x8xf32>, vector<8x8xf32> -> vector<8x8xf32>
    %65 = tpu.reciprocal %63 {approx = true} : vector<8x1xf32> -> vector<8x1xf32>
    %66 = vector.broadcast %65 : vector<8x1xf32> to vector<8x8xf32>
    %67 = arith.mulf %64, %66 : vector<8x8xf32>
    %c0_24 = arith.constant 0 : index
    %c16 = arith.constant 16 : index
    %68 = vector.load %arg9[%c0_24, %c16] : memref<16x32xf32, #tpu.memory_space<vmem>>, vector<8x8xf32>
    tpu.vector_store %arg9[%c0_24, %c16], %67 {strides = array<i32>} : memref<16x32xf32, #tpu.memory_space<vmem>>, vector<8x8xf32>,
    %69 = vector.extract_strided_slice %12 {offsets = [0, 24], sizes = [8, 8], strides = [1, 1]} : vector<16x32xf32> to vector<8x8xf32>
    %70 = vector.extract_strided_slice %16 {offsets = [24, 0], sizes = [8, 8], strides = [1, 1]} : vector<32x16xf32> to vector<8x8xf32>
    %71 = vector.extract_strided_slice %5 {offsets = [0, 24], sizes = [8, 8], strides = [1, 1]} : vector<16x32xf32> to vector<8x8xf32>
    %cst_25 = arith.constant dense<0.000000e+00> : vector<8x8xf32>
    %72 = tpu.matmul %69, %70, %cst_25 {dimension_numbers = #tpu.dot_dimension_numbers<[1], [0], [0], [1], [0, 0, 1, 1], [], []>} : vector<8x8xf32>, vector<8x8xf32>, vector<8x8xf32> -> vector<8x8xf32>
    %73 = arith.addf %72, %17 : vector<8x8xf32>
    %cst_26 = arith.constant dense<0xFF800000> : vector<8xf32>
    %74 = vector.multi_reduction <maximumf>, %73, %cst_26 [1] : vector<8x8xf32> to vector<8xf32>
    %75 = vector.shape_cast %74 : vector<8xf32> to vector<8x1xf32>
    %76 = vector.broadcast %75 : vector<8x1xf32> to vector<8x8xf32>
    %77 = arith.subf %73, %76 : vector<8x8xf32>
    %78 = math.exp %77 : vector<8x8xf32>
    %cst_27 = arith.constant dense<0.000000e+00> : vector<8xf32>
    %79 = vector.multi_reduction <add>, %78, %cst_27 [1] : vector<8x8xf32> to vector<8xf32>
    %80 = vector.shape_cast %79 : vector<8xf32> to vector<8x1xf32>
    %cst_28 = arith.constant dense<0.000000e+00> : vector<8x8xf32>
    %81 = tpu.matmul %78, %71, %cst_28 {dimension_numbers = #tpu.dot_dimension_numbers<[1], [0], [0], [1], [0, 0, 1, 1], [], []>} : vector<8x8xf32>, vector<8x8xf32>, vector<8x8xf32> -> vector<8x8xf32>
    %82 = tpu.reciprocal %80 {approx = true} : vector<8x1xf32> -> vector<8x1xf32>
    %83 = vector.broadcast %82 : vector<8x1xf32> to vector<8x8xf32>
    %84 = arith.mulf %81, %83 : vector<8x8xf32>
    %c0_29 = arith.constant 0 : index
    %c24 = arith.constant 24 : index
    %85 = vector.load %arg9[%c0_29, %c24] : memref<16x32xf32, #tpu.memory_space<vmem>>, vector<8x8xf32>
    tpu.vector_store %arg9[%c0_29, %c24], %84 {strides = array<i32>} : memref<16x32xf32, #tpu.memory_space<vmem>>, vector<8x8xf32>,
    %86 = vector.extract_strided_slice %12 {offsets = [8, 0], sizes = [8, 8], strides = [1, 1]} : vector<16x32xf32> to vector<8x8xf32>
    %87 = vector.extract_strided_slice %16 {offsets = [0, 8], sizes = [8, 8], strides = [1, 1]} : vector<32x16xf32> to vector<8x8xf32>
    %88 = vector.extract_strided_slice %5 {offsets = [8, 0], sizes = [8, 8], strides = [1, 1]} : vector<16x32xf32> to vector<8x8xf32>
    %cst_30 = arith.constant dense<0.000000e+00> : vector<8x8xf32>
    %89 = tpu.matmul %86, %87, %cst_30 {dimension_numbers = #tpu.dot_dimension_numbers<[1], [0], [0], [1], [0, 0, 1, 1], [], []>} : vector<8x8xf32>, vector<8x8xf32>, vector<8x8xf32> -> vector<8x8xf32>
    %90 = arith.addf %89, %17 : vector<8x8xf32>
    %cst_31 = arith.constant dense<0xFF800000> : vector<8xf32>
    %91 = vector.multi_reduction <maximumf>, %90, %cst_31 [1] : vector<8x8xf32> to vector<8xf32>
    %92 = vector.shape_cast %91 : vector<8xf32> to vector<8x1xf32>
    %93 = vector.broadcast %92 : vector<8x1xf32> to vector<8x8xf32>
    %94 = arith.subf %90, %93 : vector<8x8xf32>
    %95 = math.exp %94 : vector<8x8xf32>
    %cst_32 = arith.constant dense<0.000000e+00> : vector<8xf32>
    %96 = vector.multi_reduction <add>, %95, %cst_32 [1] : vector<8x8xf32> to vector<8xf32>
    %97 = vector.shape_cast %96 : vector<8xf32> to vector<8x1xf32>
    %cst_33 = arith.constant dense<0.000000e+00> : vector<8x8xf32>
    %98 = tpu.matmul %95, %88, %cst_33 {dimension_numbers = #tpu.dot_dimension_numbers<[1], [0], [0], [1], [0, 0, 1, 1], [], []>} : vector<8x8xf32>, vector<8x8xf32>, vector<8x8xf32> -> vector<8x8xf32>
    %99 = tpu.reciprocal %97 {approx = true} : vector<8x1xf32> -> vector<8x1xf32>
    %100 = vector.broadcast %99 : vector<8x1xf32> to vector<8x8xf32>
    %101 = arith.mulf %98, %100 : vector<8x8xf32>
    %c8_34 = arith.constant 8 : index
    %c0_35 = arith.constant 0 : index
    %102 = vector.load %arg9[%c8_34, %c0_35] : memref<16x32xf32, #tpu.memory_space<vmem>>, vector<8x8xf32>
    tpu.vector_store %arg9[%c8_34, %c0_35], %101 {strides = array<i32>} : memref<16x32xf32, #tpu.memory_space<vmem>>, vector<8x8xf32>,
    %103 = vector.extract_strided_slice %12 {offsets = [8, 8], sizes = [8, 8], strides = [1, 1]} : vector<16x32xf32> to vector<8x8xf32>
    %104 = vector.extract_strided_slice %16 {offsets = [8, 8], sizes = [8, 8], strides = [1, 1]} : vector<32x16xf32> to vector<8x8xf32>
    %105 = vector.extract_strided_slice %5 {offsets = [8, 8], sizes = [8, 8], strides = [1, 1]} : vector<16x32xf32> to vector<8x8xf32>
    %cst_36 = arith.constant dense<0.000000e+00> : vector<8x8xf32>
    %106 = tpu.matmul %103, %104, %cst_36 {dimension_numbers = #tpu.dot_dimension_numbers<[1], [0], [0], [1], [0, 0, 1, 1], [], []>} : vector<8x8xf32>, vector<8x8xf32>, vector<8x8xf32> -> vector<8x8xf32>
    %107 = arith.addf %106, %17 : vector<8x8xf32>
    %cst_37 = arith.constant dense<0xFF800000> : vector<8xf32>
    %108 = vector.multi_reduction <maximumf>, %107, %cst_37 [1] : vector<8x8xf32> to vector<8xf32>
    %109 = vector.shape_cast %108 : vector<8xf32> to vector<8x1xf32>
    %110 = vector.broadcast %109 : vector<8x1xf32> to vector<8x8xf32>
    %111 = arith.subf %107, %110 : vector<8x8xf32>
    %112 = math.exp %111 : vector<8x8xf32>
    %cst_38 = arith.constant dense<0.000000e+00> : vector<8xf32>
    %113 = vector.multi_reduction <add>, %112, %cst_38 [1] : vector<8x8xf32> to vector<8xf32>
    %114 = vector.shape_cast %113 : vector<8xf32> to vector<8x1xf32>
    %cst_39 = arith.constant dense<0.000000e+00> : vector<8x8xf32>
    %115 = tpu.matmul %112, %105, %cst_39 {dimension_numbers = #tpu.dot_dimension_numbers<[1], [0], [0], [1], [0, 0, 1, 1], [], []>} : vector<8x8xf32>, vector<8x8xf32>, vector<8x8xf32> -> vector<8x8xf32>
    %116 = tpu.reciprocal %114 {approx = true} : vector<8x1xf32> -> vector<8x1xf32>
    %117 = vector.broadcast %116 : vector<8x1xf32> to vector<8x8xf32>
    %118 = arith.mulf %115, %117 : vector<8x8xf32>
    %c8_40 = arith.constant 8 : index
    %c8_41 = arith.constant 8 : index
    %119 = vector.load %arg9[%c8_40, %c8_41] : memref<16x32xf32, #tpu.memory_space<vmem>>, vector<8x8xf32>
    tpu.vector_store %arg9[%c8_40, %c8_41], %118 {strides = array<i32>} : memref<16x32xf32, #tpu.memory_space<vmem>>, vector<8x8xf32>,
    %120 = vector.extract_strided_slice %12 {offsets = [8, 16], sizes = [8, 8], strides = [1, 1]} : vector<16x32xf32> to vector<8x8xf32>
    %121 = vector.extract_strided_slice %16 {offsets = [16, 8], sizes = [8, 8], strides = [1, 1]} : vector<32x16xf32> to vector<8x8xf32>
    %122 = vector.extract_strided_slice %5 {offsets = [8, 16], sizes = [8, 8], strides = [1, 1]} : vector<16x32xf32> to vector<8x8xf32>
    %cst_42 = arith.constant dense<0.000000e+00> : vector<8x8xf32>
    %123 = tpu.matmul %120, %121, %cst_42 {dimension_numbers = #tpu.dot_dimension_numbers<[1], [0], [0], [1], [0, 0, 1, 1], [], []>} : vector<8x8xf32>, vector<8x8xf32>, vector<8x8xf32> -> vector<8x8xf32>
    %124 = arith.addf %123, %17 : vector<8x8xf32>
    %cst_43 = arith.constant dense<0xFF800000> : vector<8xf32>
    %125 = vector.multi_reduction <maximumf>, %124, %cst_43 [1] : vector<8x8xf32> to vector<8xf32>
    %126 = vector.shape_cast %125 : vector<8xf32> to vector<8x1xf32>
    %127 = vector.broadcast %126 : vector<8x1xf32> to vector<8x8xf32>
    %128 = arith.subf %124, %127 : vector<8x8xf32>
    %129 = math.exp %128 : vector<8x8xf32>
    %cst_44 = arith.constant dense<0.000000e+00> : vector<8xf32>
    %130 = vector.multi_reduction <add>, %129, %cst_44 [1] : vector<8x8xf32> to vector<8xf32>
    %131 = vector.shape_cast %130 : vector<8xf32> to vector<8x1xf32>
    %cst_45 = arith.constant dense<0.000000e+00> : vector<8x8xf32>
    %132 = tpu.matmul %129, %122, %cst_45 {dimension_numbers = #tpu.dot_dimension_numbers<[1], [0], [0], [1], [0, 0, 1, 1], [], []>} : vector<8x8xf32>, vector<8x8xf32>, vector<8x8xf32> -> vector<8x8xf32>
    %133 = tpu.reciprocal %131 {approx = true} : vector<8x1xf32> -> vector<8x1xf32>
    %134 = vector.broadcast %133 : vector<8x1xf32> to vector<8x8xf32>
    %135 = arith.mulf %132, %134 : vector<8x8xf32>
    %c8_46 = arith.constant 8 : index
    %c16_47 = arith.constant 16 : index
    %136 = vector.load %arg9[%c8_46, %c16_47] : memref<16x32xf32, #tpu.memory_space<vmem>>, vector<8x8xf32>
    tpu.vector_store %arg9[%c8_46, %c16_47], %135 {strides = array<i32>} : memref<16x32xf32, #tpu.memory_space<vmem>>, vector<8x8xf32>,
    %137 = vector.extract_strided_slice %12 {offsets = [8, 24], sizes = [8, 8], strides = [1, 1]} : vector<16x32xf32> to vector<8x8xf32>
    %138 = vector.extract_strided_slice %16 {offsets = [24, 8], sizes = [8, 8], strides = [1, 1]} : vector<32x16xf32> to vector<8x8xf32>
    %139 = vector.extract_strided_slice %5 {offsets = [8, 24], sizes = [8, 8], strides = [1, 1]} : vector<16x32xf32> to vector<8x8xf32>
    %cst_48 = arith.constant dense<0.000000e+00> : vector<8x8xf32>
    %140 = tpu.matmul %137, %138, %cst_48 {dimension_numbers = #tpu.dot_dimension_numbers<[1], [0], [0], [1], [0, 0, 1, 1], [], []>} : vector<8x8xf32>, vector<8x8xf32>, vector<8x8xf32> -> vector<8x8xf32>
    %141 = arith.addf %140, %17 : vector<8x8xf32>
    %cst_49 = arith.constant dense<0xFF800000> : vector<8xf32>
    %142 = vector.multi_reduction <maximumf>, %141, %cst_49 [1] : vector<8x8xf32> to vector<8xf32>
    %143 = vector.shape_cast %142 : vector<8xf32> to vector<8x1xf32>
    %144 = vector.broadcast %143 : vector<8x1xf32> to vector<8x8xf32>
    %145 = arith.subf %141, %144 : vector<8x8xf32>
    %146 = math.exp %145 : vector<8x8xf32>
    %cst_50 = arith.constant dense<0.000000e+00> : vector<8xf32>
    %147 = vector.multi_reduction <add>, %146, %cst_50 [1] : vector<8x8xf32> to vector<8xf32>
    %148 = vector.shape_cast %147 : vector<8xf32> to vector<8x1xf32>
    %cst_51 = arith.constant dense<0.000000e+00> : vector<8x8xf32>
    %149 = tpu.matmul %146, %139, %cst_51 {dimension_numbers = #tpu.dot_dimension_numbers<[1], [0], [0], [1], [0, 0, 1, 1], [], []>} : vector<8x8xf32>, vector<8x8xf32>, vector<8x8xf32> -> vector<8x8xf32>
    %150 = tpu.reciprocal %148 {approx = true} : vector<8x1xf32> -> vector<8x1xf32>
    %151 = vector.broadcast %150 : vector<8x1xf32> to vector<8x8xf32>
    %152 = arith.mulf %149, %151 : vector<8x8xf32>
    %c8_52 = arith.constant 8 : index
    %c24_53 = arith.constant 24 : index
    %153 = vector.load %arg9[%c8_52, %c24_53] : memref<16x32xf32, #tpu.memory_space<vmem>>, vector<8x8xf32>
    tpu.vector_store %arg9[%c8_52, %c24_53], %152 {strides = array<i32>} : memref<16x32xf32, #tpu.memory_space<vmem>>, vector<8x8xf32>,
    %c0_54 = arith.constant 0 : index
    %c0_55 = arith.constant 0 : index
    %154 = vector.load %arg9[%c0_54, %c0_55] : memref<16x32xf32, #tpu.memory_space<vmem>>, vector<16x32xf32>
    %c0_56 = arith.constant 0 : index
    %c0_57 = arith.constant 0 : index
    %155 = vector.load %arg3[%c0_56, %c0_57] : memref<32x32xf32, #tpu.memory_space<vmem>>, vector<32x32xf32>
    %cst_58 = arith.constant dense<0.000000e+00> : vector<16x32xf32>
    %156 = tpu.matmul %154, %155, %cst_58 {dimension_numbers = #tpu.dot_dimension_numbers<[1], [0], [0], [1], [0, 0, 1, 1], [], []>} : vector<16x32xf32>, vector<32x32xf32>, vector<16x32xf32> -> vector<16x32xf32>
    %c0_59 = arith.constant 0 : index
    %c0_60 = arith.constant 0 : index
    %157 = vector.load %arg4[%c0_59, %c0_60] : memref<1x32xf32, #tpu.memory_space<vmem>>, vector<1x32xf32>
    %158 = vector.broadcast %157 : vector<1x32xf32> to vector<16x32xf32>
    %159 = arith.addf %156, %158 : vector<16x32xf32>
    %c0_61 = arith.constant 0 : index
    %c0_62 = arith.constant 0 : index
    %160 = vector.load %arg8[%c0_61, %c0_62] : memref<16x32xf32, #tpu.memory_space<vmem>>, vector<16x32xf32>
    tpu.vector_store %arg8[%c0_61, %c0_62], %159 {strides = array<i32>} : memref<16x32xf32, #tpu.memory_space<vmem>>, vector<16x32xf32>,
    return
  }
  func.func @transform_0(%arg0: i32) -> (i32, i32) {
    %c0_i32 = arith.constant 0 : i32
    %c0_i32_0 = arith.constant 0 : i32
    %c0_i32_1 = arith.constant 0 : i32
    return %c0_i32, %c0_i32_0 : i32, i32
  }
  func.func @transform_1(%arg0: i32) -> (i32, i32) {
    %c0_i32 = arith.constant 0 : i32
    %c0_i32_0 = arith.constant 0 : i32
    %c0_i32_1 = arith.constant 0 : i32
    return %c0_i32, %c0_i32_0 : i32, i32
  }
  func.func @transform_2(%arg0: i32) -> (i32, i32) {
    %c0_i32 = arith.constant 0 : i32
    %c0_i32_0 = arith.constant 0 : i32
    %c0_i32_1 = arith.constant 0 : i32
    return %c0_i32, %c0_i32_0 : i32, i32
  }
  func.func @transform_3(%arg0: i32) -> (i32, i32) {
    %c0_i32 = arith.constant 0 : i32
    %c0_i32_0 = arith.constant 0 : i32
    %c0_i32_1 = arith.constant 0 : i32
    return %c0_i32, %c0_i32_0 : i32, i32
  }
  func.func @transform_4(%arg0: i32) -> (i32, i32) {
    %c0_i32 = arith.constant 0 : i32
    %c0_i32_0 = arith.constant 0 : i32
    %c0_i32_1 = arith.constant 0 : i32
    return %c0_i32, %c0_i32_0 : i32, i32
  }
  func.func @transform_5(%arg0: i32) -> (i32, i32) {
    %c0_i32 = arith.constant 0 : i32
    %c0_i32_0 = arith.constant 0 : i32
    %c0_i32_1 = arith.constant 0 : i32
    return %c0_i32, %c0_i32_0 : i32, i32
  }
  func.func @transform_6(%arg0: i32) -> (i32, i32) {
    %c0_i32 = arith.constant 0 : i32
    %c0_i32_0 = arith.constant 0 : i32
    %c0_i32_1 = arith.constant 0 : i32
    return %c0_i32, %c0_i32_0 : i32, i32
  }
  func.func @transform_7(%arg0: i32) -> (i32, i32) {
    %c0_i32 = arith.constant 0 : i32
    %c0_i32_0 = arith.constant 0 : i32
    %c0_i32_1 = arith.constant 0 : i32
    return %c0_i32, %c0_i32_0 : i32, i32
  }
}

</mosaic_0001>

<bundles_post_ra>
// kernel: tpu_custom_call.1
= control target key start
LH: loop header
LB: loop body
LE: loop exit
PB: predicated region body
PF: predicated region fallthrough
CT: control target
= control target key end

     0   :  { %12 = vsyncpa [#allocation4], 0  ;;  %s2402_s0 = inlined_call_operand.hbm [shape: f32[16,32], index: 0, kind: input, shape index: {}]   ;;  %s2403_s1 = inlined_call_operand.hbm [shape: f32[32,160], index: 1, kind: input, shape index: {}]   ;;  %s2404_s2 = inlined_call_operand.hbm [shape: f32[32,32], index: 2, kind: input, shape index: {}]   ;;  %s2405_s3 = inlined_call_operand.vmem [shape: f32[1,32], index: 3, kind: input, shape index: {}]   ;;  %s2406_s4 = inlined_call_operand.hbm [shape: f32[16,32], index: 4, kind: input, shape index: {}]   ;;  %s2407_s5 = inlined_call_operand.vmem [shape: f32[16,32], index: 5, kind: input, shape index: {}]   ;;  %s2408_s6 = inlined_call_operand.hbm [shape: f32[8,8], index: 6, kind: input, shape index: {}]   ;;  %s2409_s7 = inlined_call_operand.hbm [shape: f32[16,32], index: 7, kind: output, shape index: {}]  }
   0x1   :  { %13 = vsyncpa [#allocation7], 0 }
   0x2   :  { %14 = vsyncpa [#allocation10], 0 }
   0x3   :  { %15 = vsyncpa [#allocation5], 0  ;;  %s2080_s24 = smov [#allocation6]   ;;  %s1940_s28 = scalar_lea.hbm %s2403_s1, 1024 }
   0x4   :  { %s33_s25 = sshll.u32 %s2080_s24, 4  ;;  %p1941_p0 = scmp.ne.s32.totalorder %s2403_s1, %s1940_s28  ;;  %s34_s25 = int_to_ptr.vmem [resolvable:$true] %s33_s25 }
   0x5   :  { %p1944_p1 = scmp.lt.u32.totalorder %s1940_s28, %s2403_s1 }
   0x7   :  { %p1946_p2 = pnand %p1944_p1, %p1941_p0 }
   0x9   :  { %1949 = shalt.err (!%p1946_p2)
}
   0xa   :  { %s1950_s10 = scalar_lea.vmem %s34_s25, 1024  ;;  %p1955_p4 = scmp.lt.s32.totalorder %s34_s25, %s34_s25 }
   0xb   :  { %p1951_p3 = scmp.ne.s32.totalorder %s34_s25, %s1950_s10  ;;  %p1956_p5 = scmp.lt.s32.totalorder %s1950_s10, %s1950_s10 }
   0xd   :  { %p1957_p6 = por %p1956_p5, %p1955_p4 }
   0xf   :  { %p1958_p7 = pnand %p1957_p6, %p1951_p3 }
  0x11   :  { %1961 = shalt.err (!%p1958_p7)
}
  0x12   :  { %s2081_s11 = smov 256   ;;  %s2082_s12 = smov 16  }
  0x13   :  { %39 = dma.hbm_to_vmem [thread:$0]  %s2403_s1, 1024, %s34_s25, [#allocation7], %s2081_s11, %s2081_s11, %s2082_s12  }
  0x14   :  { %s2083_s15 = smov [#allocation9]   ;;  %s2084_s17 = smov [#allocation3]  }
  0x15   :  { %s59_s16 = sshll.u32 %s2083_s15, 4  ;;  %s21_s18 = sshll.u32 %s2084_s17, 4  ;;  %s60_s16 = int_to_ptr.vmem [resolvable:$true] %s59_s16  ;;  %s22_s18 = int_to_ptr.vmem [resolvable:$true] %s21_s18 }
  0x16   :  { %s1962_s21 = scalar_lea.hbm %s2406_s4, 256 }
  0x17   :  { %p1963_p8 = scmp.ne.s32.totalorder %s2406_s4, %s1962_s21  ;;  %p1966_p9 = scmp.lt.u32.totalorder %s1962_s21, %s2406_s4 }
  0x19   :  { %p1968_p10 = pnand %p1966_p9, %p1963_p8 }
  0x1b   :  { %1971 = shalt.err (!%p1968_p10)
}
  0x1c   :  { %s1972_s1 = scalar_lea.vmem %s60_s16, 256  ;;  %p1977_p12 = scmp.lt.s32.totalorder %s60_s16, %s60_s16 }
  0x1d   :  { %p1973_p11 = scmp.ne.s32.totalorder %s60_s16, %s1972_s1  ;;  %p1978_p13 = scmp.lt.s32.totalorder %s1972_s1, %s1972_s1 }
  0x1f   :  { %p1979_p0 = por %p1978_p13, %p1977_p12 }
  0x21   :  { %p1980_p1 = pnand %p1979_p0, %p1973_p11 }
  0x23   :  { %1983 = shalt.err (!%p1980_p1)
}
  0x24   :  { %s2085_s25 = smov 128   ;;  %s2086_s27 = smov 8  }
  0x25   :  { %65 = dma.hbm_to_vmem [thread:$0]  %s2406_s4, 256, %s60_s16, [#allocation10], %s2085_s25, %s2085_s25, %s2086_s27  }
  0x26   :  { %s1984_s9 = scalar_lea.hbm %s2402_s0, 256 }
  0x27   :  { %p1985_p2 = scmp.ne.s32.totalorder %s2402_s0, %s1984_s9  ;;  %p1988_p3 = scmp.lt.u32.totalorder %s1984_s9, %s2402_s0 }
  0x29   :  { %p1990_p4 = pnand %p1988_p3, %p1985_p2 }
  0x2b   :  { %1993 = shalt.err (!%p1990_p4)
}
  0x2c   :  { %s1994_s15 = scalar_lea.vmem %s22_s18, 256  ;;  %p1999_p6 = scmp.lt.s32.totalorder %s22_s18, %s22_s18 }
  0x2d   :  { %p1995_p5 = scmp.ne.s32.totalorder %s22_s18, %s1994_s15  ;;  %p2000_p7 = scmp.lt.s32.totalorder %s1994_s15, %s1994_s15 }
  0x2f   :  { %p2001_p8 = por %p2000_p7, %p1999_p6 }
  0x31   :  { %p2002_p9 = pnand %p2001_p8, %p1995_p5 }
  0x33   :  { %2005 = shalt.err (!%p2002_p9)
}
  0x34   :  { %27 = dma.hbm_to_vmem [thread:$0]  %s2402_s0, 256, %s22_s18, [#allocation4], %s2085_s25, %s2085_s25, %s2086_s27  }
  0x35   :  { %s2087_s17 = smov [#allocation8]   ;;  %s2088_s20 = smov [#allocation11]  }
  0x36   :  { %s45_s19 = sshll.u32 %s2087_s17, 4  ;;  %s74_s21 = sshll.u32 %s2088_s20, 4  ;;  %s46_s19 = int_to_ptr.vmem [resolvable:$true] %s45_s19  ;;  %s75_s21 = int_to_ptr.vmem [resolvable:$true] %s74_s21 }
  0x37   :  { %s2006_s24 = scalar_lea.hbm %s2404_s2, 512 }
  0x38   :  { %p2007_p10 = scmp.ne.s32.totalorder %s2404_s2, %s2006_s24  ;;  %p2010_p11 = scmp.lt.u32.totalorder %s2006_s24, %s2404_s2 }
  0x3a   :  { %p2012_p12 = pnand %p2010_p11, %p2007_p10 }
  0x3c   :  { %2015 = shalt.err (!%p2012_p12)
}
  0x3d   :  { %s2016_s0 = scalar_lea.vmem %s46_s19, 512  ;;  %p2021_p0 = scmp.lt.s32.totalorder %s46_s19, %s46_s19 }
  0x3e   :  { %p2017_p13 = scmp.ne.s32.totalorder %s46_s19, %s2016_s0  ;;  %p2022_p1 = scmp.lt.s32.totalorder %s2016_s0, %s2016_s0 }
  0x40   :  { %p2023_p2 = por %p2022_p1, %p2021_p0 }
  0x42   :  { %p2024_p3 = pnand %p2023_p2, %p2017_p13 }
  0x44   :  { %2027 = shalt.err (!%p2024_p3)
}
  0x45   :  { %51 = dma.hbm_to_vmem [thread:$0]  %s2404_s2, 512, %s46_s19, [#allocation7], %s2085_s25, %s2085_s25, %s2086_s27  }
  0x46   :  { %s2028_s10 = scalar_lea.hbm %s2408_s6, 128 }
  0x47   :  { %p2029_p4 = scmp.ne.s32.totalorder %s2408_s6, %s2028_s10  ;;  %p2032_p5 = scmp.lt.u32.totalorder %s2028_s10, %s2408_s6 }
  0x49   :  { %p2034_p6 = pnand %p2032_p5, %p2029_p4 }
  0x4b   :  { %2037 = shalt.err (!%p2034_p6)
}
  0x4c   :  { %s2038_s4 = scalar_lea.vmem %s75_s21, 128  ;;  %p2043_p8 = scmp.lt.s32.totalorder %s75_s21, %s75_s21 }
  0x4d   :  { %p2039_p7 = scmp.ne.s32.totalorder %s75_s21, %s2038_s4  ;;  %p2044_p9 = scmp.lt.s32.totalorder %s2038_s4, %s2038_s4 }
  0x4f   :  { %p2045_p10 = por %p2044_p9, %p2043_p8 }
  0x51   :  { %p2046_p11 = pnand %p2045_p10, %p2039_p7 }
  0x53   :  { %2049 = shalt.err (!%p2046_p11)
}
  0x54   :  { %77 = dma.hbm_to_vmem [thread:$0]  %s2408_s6, 128, %s75_s21, [#allocation10]  }
  0x55   :  { %2072 = dma.done.wait [#allocation4], 256  }
  0x56   :  { %2073 = vsyncadd [#allocation4], 4294967040 }
  0x57   :  { %2074 = dma.done.wait [#allocation7], 1536  }
  0x58   :  { %2075 = vsyncadd [#allocation7], 4294965760 }
  0x59   :  { %2076 = dma.done.wait [#allocation10], 384  }
  0x5a   :  { %2077 = vsyncadd [#allocation10], 4294966912  ;;  %v2089_v0 = vmov 0.0   ;;  %v96_v1 = vld [vmem:[#allocation6 + $0x8] sm:$0xff]  ;;  %v98_v2 = vld [vmem:[#allocation6 + $0x18] sm:$0xff]  ;;  %s2090_s19 = smov 96  }
  0x5b   :  { %174 = vmatprep.mubr.f32.mxu0 %v2089_v0  ;;  %1776 = vmatprep.subr.mxu1 %v2089_v0  ;;  %v95_v3 = vld [vmem:[#allocation6] sm:$0xff]  ;;  %v1867_v4 = vpack.c.bf16 %v98_v2, %v96_v1  ;;  %v97_v5 = vld [vmem:[#allocation6 + $0x10] sm:$0xff]  ;;  %v100_v6 = vld [vmem:[#allocation6 + $0x28] sm:$0xff]  ;;  %s2091_s20 = smov 32   ;;  %vm103_vm0 = vcmask 261120   ;;  %vm2092_vm1 = vmmov 0  }
  0x5c   :  { %v102_v7 = vld [vmem:[#allocation6 + $0x38] sm:$0xff]  ;;  %v1869_v8 = vpack.c.bf16 %v97_v5, %v95_v3  ;;  %v99_v10 = vld [vmem:[#allocation6 + $0x20] sm:$0xff]  ;;  %v101_v11 = vld [vmem:[#allocation6 + $0x30] sm:$0xff]  ;;  %1778 = vmatprep.mubr.msk.f32.mxu1 %vm2092_vm1, %v2089_v0  ;;  %vm239_vm2 = vcmask 64512   ;;  %s2094_s23 = smov 88   ;;  %s2095_s24 = smov 120  }
  0x5d   :  { %v1871_v9 = vpack.c.bf16 %v102_v7, %v100_v6  ;;  %1868 = vmatprep.subr.bf16.mxu0 %v1867_v4  ;;  %v189_v12 = vld [vmem:[%s2407_s5] sm:$0xff]  ;;  %v1873_v14 = vpack.c.bf16 %v101_v11, %v99_v10  ;;  %v93_v15 = vld [vmem:[#allocation3] sm:$0xff]  ;;  %v94_v16 = vld [vmem:[#allocation3 + $0x8] sm:$0xff]  ;;  %s2096_s26 = smov 80   ;;  %s2097_s1 = smov 112   ;;  %vm573_vm3 = vcmask 130112  }
  0x5e   :  { %v187_v13 = vld [vmem:[#allocation9] sm:$0xff]  ;;  %1870 = vmatpush1.bf16.msra.mxu0 %v1869_v8  ;;  %195 = vrot.lane.b32.xlu1 %v189_v12, %s2090_s19  ;;  %v188_v22 = vld [vmem:[#allocation9 + $0x8] sm:$0xff]  ;;  %s2098_s28 = smov 72   ;;  %s2099_s29 = smov 104   ;;  %v2262_v45 = vld [vmem:[#allocation11] sm:$0xff]  ;;  %vm744_vm4 = vcmask 195712  }
  0x5f   :  { %1872 = vmatprep.subr.bf16.mxu0 %v1871_v9  ;;  %215 = vrot.lane.b32.xlu0 %v187_v13, %s2091_s20  ;;  %v190_v29 = vld [vmem:[%s2407_s5 + $0x8] sm:$0xff]  ;;  %s2093_s5 = smov 64   ;;  %s2100_s0 = smov 48   ;;  %vm915_vm5 = vcmask 261312  }
  0x60   :  { %s2101_s18 = smov 56   ;;  %s2102_s30 = smov 40  }
  0x61   :  { %s2103_s8 = smov 24   ;;  %s2104_s10 = smov [#allocation12]  }
  0x62   :  { %1874 = vmatpush1.bf16.msra.mxu0 %v1873_v14  ;;  %s1695_s11 = sshll.u32 %s2104_s10, 4  ;;  %s1696_s11 = int_to_ptr.vmem [resolvable:$true] %s1695_s11 }
  0x63   :  { %1791 = vmatprep.subr.mxu0 %v2089_v0  ;;  %s2050_s13 = scalar_lea.vmem %s1696_s11, 256  ;;  %p2055_p13 = scmp.lt.s32.totalorder %s1696_s11, %s1696_s11 }
  0x64   :  { %p2051_p12 = scmp.ne.s32.totalorder %s1696_s11, %s2050_s13  ;;  %p2056_p0 = scmp.lt.s32.totalorder %s2050_s13, %s2050_s13 }
  0x65   :  { %1709 = vmatmul.mubr.msk.f32.vlgmr.msra.gmra.mrb[0].mxu0 %vm103_vm0, %v93_v15 }
  0x66   :  { %180 = vmatprep.mubr.f32.mxu0 %v2089_v0  ;;  %p2057_p1 = por %p2056_p0, %p2055_p13 }
  0x68   :  { %p2058_p2 = pnand %p2057_p1, %p2051_p12 }
  0x69   :  { %1710 = vmatmul.mubr.msk.f32.gmra.mrb[2].mxu0 %vm103_vm0, %v94_v16 }
  0x6a   :  { %1793 = vmatprep.mubr.msk.f32.mxu0 %vm2092_vm1, %v2089_v0 }
  0xd0   :  { %v196_v20 = vpop.permute.xlu1 %195 }
  0xd1   :  { %v216_v25 = vpop.permute.xlu0 %215 }
 0x138   :  { %v2226_v17 = vpop.f32.mrb[0].mxu0 }
 0x139   :  { %v178_v18 = vpop.f32.mrb[1].mxu0  ;;  %v201_v21 = vmul.f32 %v196_v20, %v2226_v17  ;;  %v221_v26 = vmul.f32 %v216_v25, %v2226_v17  ;;  %v191_v32 = vmul.f32 %v187_v13, %v2226_v17 }
 0x13a   :  { %v223_v19 = vmul.f32 %v189_v12, %v178_v18 }
 0x13c   :  { %227 = vrot.lane.b32.xlu0 %v223_v19, %s2091_s20  ;;  %v2232_v23 = vpop.f32.mrb[2].mxu0 }
 0x13d   :  { %v184_v24 = vpop.f32.mrb[3].mxu0  ;;  %v192_v41 = vmul.f32 %v188_v22, %v2232_v23 }
 0x13e   :  { %v224_v30 = vmul.f32 %v190_v29, %v184_v24 }
 0x140   :  { %205 = vrot.lane.b32.xlu0 %v201_v21, %s2091_s20 }
 0x144   :  { %217 = vrot.lane.b32.xlu0 %v188_v22, %s2091_s20 }
 0x1ae   :  { %v228_v27 = vpop.permute.xlu0 %227 }
 0x1af   :  { %v233_v28 = vadd.f32 %v228_v27, %v221_v26 }
 0x1b1   :  { %237 = vrot.lane.b32.xlu1 %v233_v28, %s2090_s19 }
 0x1b2   :  { %v206_v31 = vpop.permute.xlu0 %205 }
 0x1b3   :  { %v211_v34 = vadd.f32 %v206_v31, %v191_v32 }
 0x1b5   :  { %197 = vrot.lane.b32.xlu1 %v190_v29, %s2090_s19 }
 0x1b6   :  { %v218_v37 = vpop.permute.xlu0 %217 }
 0x1b7   :  { %v222_v38 = vmul.f32 %v218_v37, %v2232_v23 }
 0x1b9   :  { %229 = vrot.lane.b32.xlu1 %v224_v30, %s2091_s20 }
 0x223   :  { %v238_v33 = vpop.permute.xlu1 %237 }
 0x224   :  { %1777 = vmatpush3.xpose.msk.msra.mxu1 %vm239_vm2, %v238_v33 }
 0x225   :  { %1781 = vmatprep.subr.mxu1 %v2089_v0 }
 0x227   :  { %v198_v35 = vpop.permute.xlu1 %197  ;;  %1779 = vmatmul.mubr.msk.f32.vlgmr.msra.gmra.mrb[0].mxu1 %vm239_vm2, %v211_v34 }
 0x228   :  { %v202_v36 = vmul.f32 %v198_v35, %v2232_v23  ;;  %1783 = vmatprep.mubr.msk.f32.mxu1 %vm2092_vm1, %v2089_v0 }
 0x22a   :  { %207 = vrot.lane.b32.xlu0 %v202_v36, %s2091_s20 }
 0x22b   :  { %v230_v39 = vpop.permute.xlu1 %229 }
 0x22c   :  { %v234_v40 = vadd.f32 %v230_v39, %v222_v38 }
 0x22e   :  { %325 = vrot.lane.b32.xlu0 %v2226_v17, %s2093_s5 }
 0x232   :  { %406 = vrot.lane.b32.xlu0 %v233_v28, %s2094_s23 }
 0x236   :  { %404 = vrot.lane.b32.xlu0 %v211_v34, %s2095_s24 }
 0x23a   :  { %577 = vrot.lane.b32.xlu0 %v233_v28, %s2096_s26 }
 0x23e   :  { %575 = vrot.lane.b32.xlu0 %v211_v34, %s2097_s1 }
 0x242   :  { %748 = vrot.lane.b32.xlu0 %v233_v28, %s2098_s28 }
 0x246   :  { %746 = vrot.lane.b32.xlu0 %v211_v34, %s2099_s29 }
 0x24a   :  { %918 = vrot.lane.b32.xlu0 %v234_v40, %s2090_s19 }
 0x24e   :  { %1086 = vrot.lane.b32.xlu0 %v234_v40, %s2094_s23 }
 0x252   :  { %1256 = vrot.lane.b32.xlu0 %v234_v40, %s2096_s26 }
 0x29c   :  { %v208_v42 = vpop.permute.xlu0 %207 }
 0x29d   :  { %v212_v43 = vadd.f32 %v208_v42, %v192_v41 }
 0x29f   :  { %1254 = vrot.lane.b32.xlu0 %v212_v43, %s2097_s1 }
 0x2a0   :  { %v326_v44 = vpop.permute.xlu0 %325 }
 0x2a1   :  { %1782 = vmatpush3.msra.mxu1 %v326_v44 }
 0x2a2   :  { %1786 = vmatprep.subr.mxu1 %v2089_v0 }
 0x2a3   :  { %1426 = vrot.lane.b32.xlu0 %v234_v40, %s2098_s28 }
 0x2a4   :  { %v407_v50 = vpop.permute.xlu0 %406 }
 0x2a7   :  { %1424 = vrot.lane.b32.xlu0 %v212_v43, %s2099_s29 }
 0x2a8   :  { %v405_v51 = vpop.permute.xlu0 %404 }
 0x2ab   :  { %662 = vrot.lane.b32.xlu0 %v2226_v17, %s2100_s0 }
 0x2ac   :  { %v578_v52 = vpop.permute.xlu0 %577 }
 0x2b0   :  { %v576_v53 = vpop.permute.xlu0 %575 }
 0x2b4   :  { %v749_v56 = vpop.permute.xlu0 %748 }
 0x2b8   :  { %v747_v60 = vpop.permute.xlu0 %746 }
 0x2bc   :  { %v919_v61 = vpop.permute.xlu0 %918 }
 0x2c0   :  { %v1087_v63 = vpop.permute.xlu0 %1086 }
 0x2c4   :  { %v1257_v1 = vpop.permute.xlu0 %1256 }
 0x2fa   :  { %v311_v46 = vpop.f32.mrb[0].mxu1 }
 0x2fb   :  { %v312_v47 = vadd.f32 %v311_v46, %v2262_v45  ;;  %v1780_v48 = vpop.f32.mrb[1].mxu1 }
 0x2fd   :  { %v315_v49 = vsel %vm239_vm2, %v312_v47, -inf }
 0x2fe   :  { %316 = vmax.xlane.f32.xlu1 %v315_v49 }
 0x30f   :  { %1084 = vrot.lane.b32.xlu1 %v212_v43, %s2095_s24 }
 0x311   :  { %v1255_v2 = vpop.permute.xlu0 %1254 }
 0x313   :  { %491 = vrot.lane.b32.xlu1 %v2226_v17, %s2101_s18 }
 0x315   :  { %v1427_v3 = vpop.permute.xlu0 %1426 }
 0x317   :  { %833 = vrot.lane.b32.xlu1 %v2226_v17, %s2102_s30 }
 0x319   :  { %v1425_v4 = vpop.permute.xlu0 %1424 }
 0x31d   :  { %v663_v37 = vpop.permute.xlu0 %662 }
 0x38b   :  { %v317_v54 = vpop.xlane.xlu1 %316 }
 0x38c   :  { %v318_v55 = vsub.f32 %v312_v47, %v317_v54 }
 0x38e   :  { %v319_v57 = vmul.f32 1.442695, %v318_v55 }
 0x38f   :  { %v1085_v58 = vpop.permute.xlu1 %1084 }
 0x390   :  { %1908 = vpow2.f32 %v319_v57 }
 0x393   :  { %v492_v59 = vpop.permute.xlu1 %491 }
 0x394   :  { %1792 = vmatpush3.msra.mxu0 %v492_v59 }
 0x395   :  { %1801 = vmatprep.subr.mxu0 %v2089_v0 }
 0x397   :  { %v834_v36 = vpop.permute.xlu1 %833 }
 0x39a   :  { %v2272_v62 = vpop.eup %1908 }
 0x39b   :  { %1784 = vmatmul.mubr.msk.f32.vlgmr.msra.gmra.mrb[2].mxu1 %vm239_vm2, %v2272_v62 }
 0x39c   :  { %1787 = vmatpush3.xpose.msk.msra.mxu1 %vm239_vm2, %v407_v50  ;;  %1788 = vmatprep.mubr.msk.f32.mxu1 %vm2092_vm1, %v2089_v0 }
 0x39d   :  { %1796 = vmatprep.subr.mxu1 %v2089_v0 }
 0x39f   :  { %1789 = vmatmul.mubr.msk.f32.vlgmr.msra.gmra.mrb[4].mxu1 %vm239_vm2, %v405_v51 }
 0x3a0   :  { %1797 = vmatpush3.xpose.msk.msra.mxu1 %vm239_vm2, %v578_v52  ;;  %1798 = vmatprep.mubr.msk.f32.mxu1 %vm2092_vm1, %v2089_v0 }
 0x3a1   :  { %1806 = vmatprep.subr.mxu1 %v2089_v0 }
 0x3a3   :  { %1799 = vmatmul.mubr.msk.f32.vlgmr.msra.gmra.mrb[6].mxu1 %vm239_vm2, %v576_v53 }
 0x3a4   :  { %1807 = vmatpush3.xpose.msk.msra.mxu1 %vm239_vm2, %v749_v56  ;;  %1808 = vmatprep.mubr.msk.f32.mxu1 %vm2092_vm1, %v2089_v0 }
 0x3a5   :  { %1816 = vmatprep.subr.mxu1 %v2089_v0 }
 0x3a7   :  { %1809 = vmatmul.mubr.msk.f32.vlgmr.msra.gmra.mrb[8].mxu1 %vm239_vm2, %v747_v60 }
 0x3a8   :  { %1817 = vmatpush3.xpose.msk.msra.mxu1 %vm239_vm2, %v919_v61  ;;  %1818 = vmatprep.mubr.msk.f32.mxu1 %vm2092_vm1, %v2089_v0 }
 0x3a9   :  { %1826 = vmatprep.subr.mxu1 %v2089_v0 }
 0x3ab   :  { %1819 = vmatmul.mubr.msk.f32.vlgmr.msra.gmra.mrb[10].mxu1 %vm239_vm2, %v212_v43 }
 0x3ac   :  { %1827 = vmatpush3.xpose.msk.msra.mxu1 %vm239_vm2, %v1087_v63  ;;  %1828 = vmatprep.mubr.msk.f32.mxu1 %vm2092_vm1, %v2089_v0 }
 0x3ad   :  { %1836 = vmatprep.subr.mxu1 %v2089_v0 }
 0x3af   :  { %1829 = vmatmul.mubr.msk.f32.vlgmr.msra.gmra.mrb[12].mxu1 %vm239_vm2, %v1085_v58 }
 0x3b0   :  { %1837 = vmatpush3.xpose.msk.msra.mxu1 %vm239_vm2, %v1257_v1  ;;  %1838 = vmatprep.mubr.msk.f32.mxu1 %vm2092_vm1, %v2089_v0 }
 0x3b1   :  { %1846 = vmatprep.subr.mxu1 %v2089_v0 }
 0x3b3   :  { %1839 = vmatmul.mubr.msk.f32.vlgmr.msra.gmra.mrb[14].mxu1 %vm239_vm2, %v1255_v2 }
 0x3b4   :  { %1847 = vmatpush3.xpose.msk.msra.mxu1 %vm239_vm2, %v1427_v3  ;;  %1848 = vmatprep.mubr.msk.f32.mxu1 %vm2092_vm1, %v2089_v0 }
 0x3b7   :  { %1849 = vmatmul.mubr.msk.f32.vlgmr.msra.gmra.mrb[16].mxu1 %vm239_vm2, %v1425_v4 }
 0x46e   :  { %v2310_v5 = vpop.f32.mrb[2].mxu1 }
 0x46f   :  { %v1785_v6 = vpop.f32.mrb[3].mxu1 }
 0x472   :  { %v478_v7 = vpop.f32.mrb[4].mxu1 }
 0x473   :  { %v479_v8 = vadd.f32 %v478_v7, %v2262_v45  ;;  %v1790_v9 = vpop.f32.mrb[5].mxu1 }
 0x475   :  { %v482_v10 = vsel %vm239_vm2, %v479_v8, -inf }
 0x476   :  { %483 = vmax.xlane.f32.xlu1 %v482_v10  ;;  %v649_v11 = vpop.f32.mrb[6].mxu1 }
 0x477   :  { %v650_v12 = vadd.f32 %v649_v11, %v2262_v45  ;;  %v1800_v13 = vpop.f32.mrb[7].mxu1 }
 0x479   :  { %v653_v14 = vsel %vm239_vm2, %v650_v12, -inf }
 0x47a   :  { %654 = vmax.xlane.f32.xlu0 %v653_v14  ;;  %v820_v15 = vpop.f32.mrb[8].mxu1 }
 0x47b   :  { %v821_v16 = vadd.f32 %v820_v15, %v2262_v45  ;;  %v1810_v17 = vpop.f32.mrb[9].mxu1 }
 0x47d   :  { %v824_v18 = vsel %vm239_vm2, %v821_v16, -inf }
 0x47e   :  { %825 = vmax.xlane.f32.xlu0 %v824_v18  ;;  %v991_v19 = vpop.f32.mrb[10].mxu1 }
 0x47f   :  { %v1820_v20 = vpop.f32.mrb[11].mxu1  ;;  %v992_v30 = vadd.f32 %v991_v19, %v2262_v45 }
 0x481   :  { %v995_v32 = vsel %vm239_vm2, %v992_v30, -inf }
 0x482   :  { %v1158_v21 = vpop.f32.mrb[12].mxu1 }
 0x483   :  { %v1159_v22 = vadd.f32 %v1158_v21, %v2262_v45  ;;  %v1830_v24 = vpop.f32.mrb[13].mxu1 }
 0x485   :  { %v1162_v25 = vsel %vm239_vm2, %v1159_v22, -inf }
 0x486   :  { %1163 = vmax.xlane.f32.xlu0 %v1162_v25  ;;  %v1328_v26 = vpop.f32.mrb[14].mxu1 }
 0x487   :  { %1005 = vrot.lane.b32.xlu1 %v2232_v23, %s2093_s5  ;;  %v1840_v27 = vpop.f32.mrb[15].mxu1  ;;  %v1329_v31 = vadd.f32 %v1328_v26, %v2262_v45 }
 0x489   :  { %v1332_v33 = vsel %vm239_vm2, %v1329_v31, -inf }
 0x48a   :  { %v1498_v28 = vpop.f32.mrb[16].mxu1 }
 0x48b   :  { %v1850_v29 = vpop.f32.mrb[17].mxu1  ;;  %v2329_v34 = vadd.f32 %v1498_v28, %v2262_v45 }
 0x48d   :  { %v1502_v35 = vsel %vm239_vm2, %v2329_v34, -inf }
 0x49c   :  { %1171 = vrot.lane.b32.xlu0 %v2232_v23, %s2101_s18 }
 0x4ab   :  { %996 = vmax.xlane.f32.xlu1 %v995_v32 }
 0x4af   :  { %1333 = vmax.xlane.f32.xlu1 %v1332_v33 }
 0x4bb   :  { %1503 = vmax.xlane.f32.xlu0 %v1502_v35 }
 0x4c0   :  { %1341 = vrot.lane.b32.xlu1 %v2232_v23, %s2100_s0 }
 0x4d1   :  { %1511 = vrot.lane.b32.xlu0 %v2232_v23, %s2102_s30 }
 0x503   :  { %v484_v38 = vpop.xlane.xlu1 %483 }
 0x504   :  { %v485_v39 = vsub.f32 %v479_v8, %v484_v38 }
 0x506   :  { %v486_v40 = vmul.f32 1.442695, %v485_v39 }
 0x507   :  { %v655_v41 = vpop.xlane.xlu0 %654  ;;  %v1006_v54 = vpop.permute.xlu1 %1005 }
 0x508   :  { %1910 = vpow2.f32 %v486_v40  ;;  %v656_v42 = vsub.f32 %v650_v12, %v655_v41  ;;  %v321_v12 = vsel %vm239_vm2, %v2272_v62, 0.0 }
 0x50a   :  { %v657_v43 = vmul.f32 1.442695, %v656_v42  ;;  %v1596_v42 = vld [vmem:[#allocation8] sm:$0xff] }
 0x50b   :  { %v826_v44 = vpop.xlane.xlu0 %825 }
 0x50c   :  { %1912 = vpow2.f32 %v657_v43  ;;  %v827_v45 = vsub.f32 %v821_v16, %v826_v44  ;;  %v1597_v43 = vld [vmem:[#allocation8 + $0x8] sm:$0xff] }
 0x50e   :  { %v828_v46 = vmul.f32 1.442695, %v827_v45 }
 0x510   :  { %1914 = vpow2.f32 %v828_v46  ;;  %v1875_v46 = vpack.c.bf16 %v1597_v43, %v1596_v42 }
 0x512   :  { %v1911_v47 = vpop.eup %1910  ;;  %1876 = vmatprep.subr.bf16.mxu1 %v1875_v46 }
 0x513   :  { %v1164_v48 = vpop.xlane.xlu0 %1163  ;;  %1794 = vmatmul.mubr.msk.f32.vlgmr.msra.gmra.mrb[4].mxu0 %vm239_vm2, %v1911_v47  ;;  %v488_v23 = vsel %vm239_vm2, %v1911_v47, 0.0  ;;  %v1598_v47 = vld [vmem:[#allocation8 + $0x10] sm:$0xff]  ;;  %1878 = vmatpush3.bf16.msra.mxu1 %v1875_v46 }
 0x514   :  { %v1165_v49 = vsub.f32 %v1159_v22, %v1164_v48  ;;  %1802 = vmatpush3.msra.mxu0 %v663_v37  ;;  %489 = vadd.xlane.f32.xlu1 %v488_v23  ;;  %v1599_v48 = vld [vmem:[#allocation8 + $0x18] sm:$0xff] }
 0x515   :  { %1803 = vmatprep.mubr.msk.f32.mxu0 %vm2092_vm1, %v2089_v0  ;;  %1811 = vmatprep.subr.mxu0 %v2089_v0  ;;  %v1879_v23 = vpack.c.bf16 %v1599_v48, %v1598_v47 }
 0x516   :  { %v1913_v50 = vpop.eup %1912  ;;  %v1166_v51 = vmul.f32 1.442695, %v1165_v49 }
 0x517   :  { %1804 = vmatmul.mubr.msk.f32.vlgmr.msra.gmra.mrb[6].mxu0 %vm239_vm2, %v1913_v50  ;;  %v659_v52 = vsel %vm239_vm2, %v1913_v50, 0.0  ;;  %v1172_v2 = vpop.permute.xlu0 %1171  ;;  %1880 = vmatprep.subr.bf16.mxu1 %v1879_v23 }
 0x518   :  { %1916 = vpow2.f32 %v1166_v51  ;;  %1812 = vmatpush3.msra.mxu0 %v834_v36  ;;  %660 = vadd.xlane.f32.xlu0 %v659_v52 }
 0x519   :  { %1813 = vmatprep.mubr.msk.f32.mxu0 %vm2092_vm1, %v2089_v0  ;;  %1821 = vmatprep.subr.mxu0 %v2089_v0 }
 0x51a   :  { %v1915_v53 = vpop.eup %1914  ;;  %1882 = vmatpush3.bf16.msra.mxu1 %v1879_v23 }
 0x51b   :  { %1814 = vmatmul.mubr.msk.f32.vlgmr.msra.gmra.mrb[8].mxu0 %vm239_vm2, %v1915_v53  ;;  %v830_v55 = vsel %vm239_vm2, %v1915_v53, 0.0 }
 0x51c   :  { %1822 = vmatpush3.msra.mxu0 %v1006_v54  ;;  %831 = vadd.xlane.f32.xlu1 %v830_v55 }
 0x51d   :  { %1823 = vmatprep.mubr.msk.f32.mxu0 %vm2092_vm1, %v2089_v0  ;;  %1831 = vmatprep.subr.mxu0 %v2089_v0 }
 0x522   :  { %v1917_v56 = vpop.eup %1916 }
 0x523   :  { %v1168_v57 = vsel %vm239_vm2, %v1917_v56, 0.0 }
 0x524   :  { %1169 = vadd.xlane.f32.xlu0 %v1168_v57 }
 0x538   :  { %v997_v58 = vpop.xlane.xlu1 %996 }
 0x539   :  { %v998_v59 = vsub.f32 %v992_v30, %v997_v58 }
 0x53b   :  { %v999_v60 = vmul.f32 1.442695, %v998_v59 }
 0x53c   :  { %v1334_v61 = vpop.xlane.xlu1 %1333 }
 0x53d   :  { %1918 = vpow2.f32 %v999_v60  ;;  %v1335_v63 = vsub.f32 %v1329_v31, %v1334_v61 }
 0x53f   :  { %v1336_v1 = vmul.f32 1.442695, %v1335_v63 }
 0x540   :  { %v1342_v9 = vpop.permute.xlu1 %1341 }
 0x541   :  { %1920 = vpow2.f32 %v1336_v1 }
 0x547   :  { %v1919_v3 = vpop.eup %1918 }
 0x548   :  { %v1504_v4 = vpop.xlane.xlu0 %1503  ;;  %1824 = vmatmul.mubr.msk.f32.vlgmr.msra.gmra.mrb[10].mxu0 %vm239_vm2, %v1919_v3  ;;  %v1001_v15 = vsel %vm239_vm2, %v1919_v3, 0.0  ;;  %v1735_v3 = vld [vmem:[%s2405_s3] ss:$0 sm:$0xff] }
 0x549   :  { %v1505_v6 = vsub.f32 %v2329_v34, %v1504_v4  ;;  %1832 = vmatpush3.msra.mxu0 %v1172_v2  ;;  %1833 = vmatprep.mubr.msk.f32.mxu0 %vm2092_vm1, %v2089_v0 }
 0x54a   :  { %1841 = vmatprep.subr.mxu0 %v2089_v0 }
 0x54b   :  { %v1921_v7 = vpop.eup %1920  ;;  %v1506_v8 = vmul.f32 1.442695, %v1505_v6 }
 0x54c   :  { %1834 = vmatmul.mubr.msk.f32.vlgmr.msra.gmra.mrb[12].mxu0 %vm239_vm2, %v1917_v56  ;;  %v1338_v10 = vsel %vm239_vm2, %v1921_v7, 0.0  ;;  %v1512_v11 = vpop.permute.xlu0 %1511 }
 0x54d   :  { %1922 = vpow2.f32 %v1506_v8  ;;  %1842 = vmatpush3.msra.mxu0 %v1342_v9  ;;  %1339 = vadd.xlane.f32.xlu0 %v1338_v10 }
 0x54e   :  { %1843 = vmatprep.mubr.msk.f32.mxu0 %vm2092_vm1, %v2089_v0  ;;  %1851 = vmatprep.subr.mxu0 %v2089_v0 }
 0x550   :  { %1844 = vmatmul.mubr.msk.f32.vlgmr.msra.gmra.mrb[14].mxu0 %vm239_vm2, %v1921_v7 }
 0x551   :  { %1852 = vmatpush3.msra.mxu0 %v1512_v11  ;;  %322 = vadd.xlane.f32.xlu0 %v321_v12 }
 0x552   :  { %1853 = vmatprep.mubr.msk.f32.mxu0 %vm2092_vm1, %v2089_v0 }
 0x557   :  { %v1923_v13 = vpop.eup %1922 }
 0x558   :  { %1854 = vmatmul.mubr.msk.f32.vlgmr.msra.gmra.mrb[16].mxu0 %vm239_vm2, %v1923_v13  ;;  %v1508_v14 = vsel %vm239_vm2, %v1923_v13, 0.0 }
 0x559   :  { %1509 = vadd.xlane.f32.xlu1 %v1508_v14 }
 0x55d   :  { %1002 = vadd.xlane.f32.xlu1 %v1001_v15 }
 0x5a1   :  { %v490_v18 = vpop.xlane.xlu1 %489 }
 0x5a2   :  { %1924 = vrcp.f32 %v490_v18 }
 0x5a5   :  { %v661_v16 = vpop.xlane.xlu0 %660 }
 0x5a9   :  { %v832_v20 = vpop.xlane.xlu1 %831 }
 0x5ac   :  { %v1925_v0 = vpop.eup %1924 }
 0x5b1   :  { %v1170_v17 = vpop.xlane.xlu0 %1169 }
 0x5da   :  { %v1340_v19 = vpop.xlane.xlu0 %1339 }
 0x5de   :  { %v323_v62 = vpop.xlane.xlu0 %322 }
 0x5df   :  { %1926 = vrcp.f32 %v323_v62 }
 0x5e0   :  { %1928 = vrcp.f32 %v661_v16 }
 0x5e1   :  { %1930 = vrcp.f32 %v832_v20 }
 0x5e6   :  { %v563_v21 = vpop.f32.mrb[4].mxu0  ;;  %v1510_v35 = vpop.xlane.xlu1 %1509 }
 0x5e7   :  { %v568_v22 = vmul.f32 %v1925_v0, %v563_v21  ;;  %v1795_v24 = vpop.f32.mrb[5].mxu0 }
 0x5e9   :  { %v1927_v25 = vpop.eup %1926  ;;  %570 = vrot.lane.b32.xlu0 %v568_v22, %s2086_s27 }
 0x5ea   :  { %v1929_v26 = vpop.eup %1928  ;;  %v402_v27 = vmul.f32 %v1927_v25, %v2310_v5  ;;  %v734_v28 = vpop.f32.mrb[6].mxu0 }
 0x5eb   :  { %v739_v29 = vmul.f32 %v1929_v26, %v734_v28  ;;  %v1805_v30 = vpop.f32.mrb[7].mxu0  ;;  %v1931_v31 = vpop.eup %1930 }
 0x5ec   :  { %403 = vst.msk [vmem:[#allocation2] sm:$0xff] %vm239_vm2, %v402_v27  ;;  %v1003_v36 = vpop.xlane.xlu1 %1002 }
 0x5ed   :  { %741 = vrot.lane.b32.xlu1 %v739_v29, %s2082_s12  ;;  %1932 = vrcp.f32 %v1003_v36 }
 0x5ee   :  { %v905_v32 = vpop.f32.mrb[8].mxu0  ;;  %1934 = vrcp.f32 %v1170_v17 }
 0x5ef   :  { %v910_v33 = vmul.f32 %v1931_v31, %v905_v32  ;;  %v1815_v34 = vpop.f32.mrb[9].mxu0  ;;  %1936 = vrcp.f32 %v1340_v19 }
 0x5f0   :  { %1938 = vrcp.f32 %v1510_v35 }
 0x5f1   :  { %912 = vrot.lane.b32.xlu0 %v910_v33, %s2103_s8 }
 0x5f7   :  { %v1933_v5 = vpop.eup %1932 }
 0x5f8   :  { %v1935_v40 = vpop.eup %1934 }
 0x5f9   :  { %v1937_v49 = vpop.eup %1936 }
 0x5fa   :  { %v1939_v53 = vpop.eup %1938 }
 0x61b   :  { %v1077_v37 = vpop.f32.mrb[10].mxu0 }
 0x61c   :  { %v1082_v38 = vmul.f32 %v1933_v5, %v1077_v37  ;;  %v1825_v39 = vpop.f32.mrb[11].mxu0 }
 0x61e   :  { %1083 = vst.msk [vmem:[#allocation2 + $0x8] sm:$0xff] %vm239_vm2, %v1082_v38 }
 0x61f   :  { %v1243_v41 = vpop.f32.mrb[12].mxu0 }
 0x620   :  { %v1248_v44 = vmul.f32 %v1935_v40, %v1243_v41  ;;  %v1835_v45 = vpop.f32.mrb[13].mxu0 }
 0x622   :  { %1250 = vrot.lane.b32.xlu1 %v1248_v44, %s2086_s27 }
 0x623   :  { %v1413_v50 = vpop.f32.mrb[14].mxu0 }
 0x624   :  { %v1418_v51 = vmul.f32 %v1937_v49, %v1413_v50  ;;  %v1845_v52 = vpop.f32.mrb[15].mxu0 }
 0x626   :  { %1420 = vrot.lane.b32.xlu1 %v1418_v51, %s2082_s12 }
 0x62b   :  { %v1583_v54 = vpop.f32.mrb[16].mxu0 }
 0x62c   :  { %v1588_v55 = vmul.f32 %v1939_v53, %v1583_v54  ;;  %v1855_v56 = vpop.f32.mrb[17].mxu0 }
 0x62e   :  { %1590 = vrot.lane.b32.xlu0 %v1588_v55, %s2103_s8 }
 0x65b   :  { %v571_v57 = vpop.permute.xlu0 %570 }
 0x65c   :  { %574 = vst.msk [vmem:[#allocation2] sm:$0xff] %vm573_vm3, %v571_v57 }
 0x65f   :  { %v742_v58 = vpop.permute.xlu1 %741 }
 0x660   :  { %745 = vst.msk [vmem:[#allocation2] sm:$0xff] %vm744_vm4, %v742_v58 }
 0x663   :  { %v913_v59 = vpop.permute.xlu0 %912 }
 0x664   :  { %916 = vst.msk [vmem:[#allocation2] sm:$0xff] %vm915_vm5, %v913_v59 }
 0x66b   :  { %v1594_v60 = vld [vmem:[#allocation2] sm:$0xff] }
 0x66c   :  { %1864 = vmatprep.mubr.msk.f32.mxu1 %vm103_vm0, %v1594_v60 }
 0x694   :  { %v1251_v61 = vpop.permute.xlu1 %1250 }
 0x695   :  { %1253 = vst.msk [vmem:[#allocation2 + $0x8] sm:$0xff] %vm573_vm3, %v1251_v61 }
 0x698   :  { %v1421_v63 = vpop.permute.xlu1 %1420 }
 0x699   :  { %1423 = vst.msk [vmem:[#allocation2 + $0x8] sm:$0xff] %vm744_vm4, %v1421_v63 }
 0x6a0   :  { %v1591_v1 = vpop.permute.xlu0 %1590 }
 0x6a1   :  { %1593 = vst.msk [vmem:[#allocation2 + $0x8] sm:$0xff] %vm915_vm5, %v1591_v1 }
 0x6a8   :  { %v1595_v2 = vld [vmem:[#allocation2 + $0x8] sm:$0xff] }
 0x6a9   :  { %1865 = vmatmul.mubr.msk.f32.vlgmr.msra.gmra.mrb[18].mxu1 %vm103_vm0, %v1595_v2 }
 0x77c   :  { %v1866_v4 = vpop.f32.mrb[18].mxu1 }
 0x77d   :  { %v1685_v6 = vadd.f32 %v1866_v4, %v1735_v3  ;;  %v1679_v7 = vpop.f32.mrb[19].mxu1 }
 0x77e   :  { %v1680_v8 = vadd.f32 %v1735_v3, %v1679_v7 }
 0x77f   :  { %1689 = vst.msk [vmem:[#allocation12 + $0x8] sm:$0xff] %vm103_vm0, %v1685_v6 }
 0x780   :  { %1688 = vst.msk [vmem:[#allocation12] sm:$0xff] %vm103_vm0, %v1680_v8 }
 0x781   :  { %2061 = shalt.err (!%p2058_p2)
}
 0x782   :  { %s2062_s15 = scalar_lea.hbm %s2409_s7, 256 }
 0x783   :  { %p2063_p3 = scmp.ne.s32.totalorder %s2409_s7, %s2062_s15  ;;  %p2066_p4 = scmp.lt.u32.totalorder %s2062_s15, %s2409_s7 }
 0x785   :  { %p2068_p5 = pnand %p2066_p4, %p2063_p3 }
 0x787   :  { %2071 = shalt.err (!%p2068_p5)
}
 0x788   :  { %1701 = dma.vmem_to_hbm [thread:$0]  %s1696_s11, 256, %s2409_s7, [#allocation5], %s2085_s25, %s2085_s25, %s2086_s27  }
 0x789   :  { %2078 = dma.done.wait [#allocation5], 256  }
 0x78a   :  { %2079 = vsyncadd [#allocation5], 4294967040 }
 0x78b   :  { %1705 = vsyncpa [#allocation4], 1 }
 0x78c   :  { %1706 = vsyncpa [#allocation7], 1 }
 0x78d   :  { %1707 = vsyncpa [#allocation10], 1 }
 0x78e   :  { %1708 = vsyncpa [#allocation5], 1 }

</bundles_post_ra>
